<compile_context>
chip_gen: v7x
topology: tpu7x:2x2x1
jax: 0.10.0
libtpu: 0.0.40
codegen_flags: <defaults>
</compile_context>

<pallas_src>
import jax
import jax.numpy as jnp
from jax.experimental import pallas as pl
from jax.experimental.pallas import tpu as pltpu


def _logreg_kernel(x_ref, w_ref, b_ref, o_ref):
    # x_ref: (TB, F) VMEM tile of the batch (streamed / pipelined)
    # w_ref: (1, F)  VMEM-resident weight row (PyTorch layout)
    # b_ref: (1,)    SMEM scalar bias
    # o_ref: (1, 1, TB) lane-dense output slab (batch on the 128-lane axis)
    x = x_ref[...]                                   # (TB, F)
    w = w_ref[...]                                   # (1, F)
    b = b_ref[0]                                     # scalar

    # Contract F of w with F of x -> (1, TB): logits are produced lane-dense
    # directly, no (TB, 1) column intermediate and no relayout.
    logits = jax.lax.dot_general(
        w, x, (((1,), (1,)), ((), ())),
        preferred_element_type=jnp.float32) + b       # (1, TB)

    tb = logits.shape[1]
    # (1, TB) -> (1, 1, TB) is just a leading unit dim (layout-trivial).
    o_ref[...] = jax.nn.sigmoid(logits).reshape(1, 1, tb).astype(o_ref.dtype)


def _choose_batch_tile(B, F, *, target_bytes=8 * 1024 * 1024, max_tb=32768):
    """Pick a batch tile: whole batch if tiny, else a 128-multiple sized from a
    VMEM byte budget, with at least 2 tiles for B > 128 (v7x megacore)."""
    if B <= 128:
        return B                       # single tile; block equals full array dims
    tb = (target_bytes // (4 * F)) // 128 * 128
    tb = max(128, min(tb, max_tb))
    # Cap at ceil(B/2) rounded up to 128 so there are >= 2 (roughly balanced) tiles.
    half = -(-B // 2)
    half_r = -(-half // 128) * 128
    return min(tb, half_r)


def logistic_regression(x, weight, bias):
    """x: (B, F) f32; weight: (1, F) f32 (PyTorch layout); bias: (1,) f32.

    Returns sigmoid(x @ weight.T + bias) with shape (B, 1).
    """
    B, F = x.shape
    x = x.astype(jnp.float32)
    w = weight.astype(jnp.float32)              # (1, F), no transpose needed
    b1 = bias.reshape(1).astype(jnp.float32)    # (1,) scalar for SMEM

    tb = _choose_batch_tile(B, F)
    num_tiles = pl.cdiv(B, tb)                  # ragged last tile allowed (no jnp.pad)

    out = pl.pallas_call(
        _logreg_kernel,
        out_shape=jax.ShapeDtypeStruct((num_tiles, 1, tb), jnp.float32),
        grid_spec=pltpu.PrefetchScalarGridSpec(
            num_scalar_prefetch=0,
            grid=(num_tiles,),
            in_specs=[
                # x: streamed one (TB, F) tile per grid step (double-buffered).
                pl.BlockSpec((tb, F), lambda i: (i, 0)),
                # weight: same block every step -> stays resident in VMEM.
                pl.BlockSpec((1, F), lambda i: (0, 0)),
                # bias: tiny scalar -> SMEM, no VMEM tile / DMA bookkeeping.
                pl.BlockSpec(memory_space=pltpu.MemorySpace.SMEM),
            ],
            # Lane-dense output slab: one (1, 1, TB) row per grid step.
            out_specs=pl.BlockSpec((1, 1, tb), lambda i: (i, 0, 0)),
        ),
        compiler_params=pltpu.CompilerParams(
            # Batch tiles are independent (no accumulator) -> parallel grid axis
            # (shardable across TensorCores on v7x).
            dimension_semantics=("parallel",),
            # ~16 MiB actual usage with the 8 MiB/buffer budget; 32 MiB is safe
            # on every generation (v7x scoped default included).
            vmem_limit_bytes=32 * 1024 * 1024,
        ),
    )(x, w, b1)

    # (num_tiles, 1, TB) -> (B, 1); drops the garbage rows of a ragged last tile.
    return out.reshape(-1)[:B].reshape(B, 1)


if __name__ == "__main__":
    key = jax.random.PRNGKey(0)
    k_x, k_w, k_b = jax.random.split(key, 3)

    # Small demo shapes matching the module (single-tile path).
    batch = 8
    n_features = 32

    x = jax.random.normal(k_x, (batch, n_features), dtype=jnp.float32)
    # Deterministic parameter init (mimics nn.Linear's uniform(-1/sqrt(F), 1/sqrt(F))).
    bound = 1.0 / jnp.sqrt(float(n_features))
    weight = jax.random.uniform(k_w, (1, n_features), jnp.float32, -bound, bound)
    bias = jax.random.uniform(k_b, (1,), jnp.float32, -bound, bound)

    y = jax.block_until_ready(logistic_regression(x, weight, bias))
    y_ref = jax.nn.sigmoid(x @ weight.T + bias)
    assert y.shape == (batch, 1)
    assert jnp.allclose(y, y_ref, atol=1e-5), "mismatch vs reference (small)"

    # Second check: multi-tile + ragged last-tile path (B=1030 -> 2 tiles of 640).
    k_x2, k_w2, k_b2 = jax.random.split(jax.random.PRNGKey(1), 3)
    batch2, feat2 = 1030, 128
    x2 = jax.random.normal(k_x2, (batch2, feat2), dtype=jnp.float32)
    bound2 = 1.0 / jnp.sqrt(float(feat2))
    w2 = jax.random.uniform(k_w2, (1, feat2), jnp.float32, -bound2, bound2)
    b2 = jax.random.uniform(k_b2, (1,), jnp.float32, -bound2, bound2)

    y2 = jax.block_until_ready(logistic_regression(x2, w2, b2))
    y2_ref = jax.nn.sigmoid(x2 @ w2.T + b2)
    assert y2.shape == (batch2, 1)
    assert jnp.allclose(y2, y2_ref, atol=1e-5), "mismatch vs reference (tiled/ragged)"

    print("KERNEL_OK")
</pallas_src>

<mosaic_0001>
module attributes {stable_mosaic.version = 11 : i64} {
  func.func @_logreg_kernel(%arg0: i32, %arg1: memref<8x32xf32, #tpu.memory_space<vmem>>, %arg2: memref<1x32xf32, #tpu.memory_space<vmem>>, %arg3: memref<1xf32, #tpu.memory_space<smem>>, %arg4: memref<1x1x8xf32, #tpu.memory_space<vmem>>) attributes {dimension_semantics = [#tpu.dimension_semantics<parallel>], iteration_bounds = array<i64: 1>, scalar_prefetch = 0 : i64, scratch_operands = 0 : i64, tpu.core_type = #tpu.core_type<tc>, window_params = [{transform_indices = @transform_0, window_bounds = array<i64: 8, 32>}, {pipeline_mode = #tpu.pipeline_mode<synchronous>, transform_indices = @transform_1, window_bounds = array<i64: 1, 32>}, {transform_indices = @transform_2, window_bounds = array<i64: 1>}, {transform_indices = @transform_3, window_bounds = array<i64: 1, 1, 8>}]} {
    %c0 = arith.constant 0 : index
    %c0_0 = arith.constant 0 : index
    %0 = vector.load %arg1[%c0, %c0_0] : memref<8x32xf32, #tpu.memory_space<vmem>>, vector<8x32xf32>
    %c0_1 = arith.constant 0 : index
    %c0_2 = arith.constant 0 : index
    %1 = vector.load %arg2[%c0_1, %c0_2] : memref<1x32xf32, #tpu.memory_space<vmem>>, vector<1x32xf32>
    %c0_3 = arith.constant 0 : index
    %2 = memref.load %arg3[%c0_3] : memref<1xf32, #tpu.memory_space<smem>>
    %cst = arith.constant dense<0.000000e+00> : vector<1x8xf32>
    %3 = tpu.matmul %1, %0, %cst {dimension_numbers = #tpu.dot_dimension_numbers<[1], [1], [0], [0], [0, 0, 1, 0], [], []>} : vector<1x32xf32>, vector<8x32xf32>, vector<1x8xf32> -> vector<1x8xf32>
    %4 = vector.broadcast %2 : f32 to vector<1x8xf32>
    %5 = arith.addf %3, %4 : vector<1x8xf32>
    %6 = arith.negf %5 : vector<1x8xf32>
    %7 = math.exp %6 : vector<1x8xf32>
    %cst_4 = arith.constant 1.000000e+00 : f32
    %8 = vector.broadcast %cst_4 : f32 to vector<1x8xf32>
    %9 = arith.addf %8, %7 : vector<1x8xf32>
    %10 = arith.divf %8, %9 : vector<1x8xf32>
    %11 = vector.shape_cast %10 : vector<1x8xf32> to vector<1x1x8xf32>
    %c0_5 = arith.constant 0 : index
    %c0_6 = arith.constant 0 : index
    %c0_7 = arith.constant 0 : index
    %12 = vector.load %arg4[%c0_5, %c0_6, %c0_7] : memref<1x1x8xf32, #tpu.memory_space<vmem>>, vector<1x1x8xf32>
    tpu.vector_store %arg4[%c0_5, %c0_6, %c0_7], %11 {strides = array<i32>} : memref<1x1x8xf32, #tpu.memory_space<vmem>>, vector<1x1x8xf32>,
    return
  }
  func.func @transform_0(%arg0: i32) -> (i32, i32) {
    %c0_i32 = arith.constant 0 : i32
    %c0_i32_0 = arith.constant 0 : i32
    return %arg0, %c0_i32 : i32, i32
  }
  func.func @transform_1(%arg0: i32) -> (i32, i32) {
    %c0_i32 = arith.constant 0 : i32
    %c0_i32_0 = arith.constant 0 : i32
    %c0_i32_1 = arith.constant 0 : i32
    return %c0_i32, %c0_i32_0 : i32, i32
  }
  func.func @transform_2(%arg0: i32) -> i32 {
    %c0_i32 = arith.constant 0 : i32
    %c0_i32_0 = arith.constant 0 : i32
    return %c0_i32 : i32
  }
  func.func @transform_3(%arg0: i32) -> (i32, i32, i32) {
    %c0_i32 = arith.constant 0 : i32
    %c0_i32_0 = arith.constant 0 : i32
    %c0_i32_1 = arith.constant 0 : i32
    return %arg0, %c0_i32, %c0_i32_0 : i32, i32, i32
  }
}

</mosaic_0001>

<bundles_post_ra>
// kernel: tpu_custom_call.1
= control target key start
LH: loop header
LB: loop body
LE: loop exit
PB: predicated region body
PF: predicated region fallthrough
CT: control target
= control target key end

     0   :  { %9 = vsyncpa [#allocation4], 0  ;;  %s252_s0 = inlined_call_operand.hbm [shape: f32[8,32], index: 0, kind: input, shape index: {}]   ;;  %s253_s1 = inlined_call_operand.vmem [shape: f32[1,32], index: 1, kind: input, shape index: {}]   ;;  %s254_s2 = inlined_call_operand.<no memory space> [shape: f32[1], index: 2, kind: input, shape index: {}]   ;;  %s255_s3 = inlined_call_operand.hbm [shape: f32[1,1,8], index: 3, kind: output, shape index: {}]  }
   0x1   :  { %10 = vsyncpa [#allocation5], 0  ;;  %s198_s12 = smov [#allocation3]   ;;  %s150_s16 = scalar_lea.hbm %s252_s0, 128 }
   0x2   :  { %s17_s13 = sshll.u32 %s198_s12, 4  ;;  %p151_p0 = scmp.ne.s32.totalorder %s252_s0, %s150_s16  ;;  %s18_s13 = int_to_ptr.vmem [resolvable:$true] %s17_s13 }
   0x3   :  { %p154_p1 = scmp.lt.u32.totalorder %s150_s16, %s252_s0 }
   0x5   :  { %p156_p2 = pnand %p154_p1, %p151_p0 }
   0x7   :  { %159 = shalt.err (!%p156_p2)
}
   0x8   :  { %s160_s21 = scalar_lea.vmem %s18_s13, 128  ;;  %p165_p4 = scmp.lt.s32.totalorder %s18_s13, %s18_s13 }
   0x9   :  { %p161_p3 = scmp.ne.s32.totalorder %s18_s13, %s160_s21  ;;  %p166_p5 = scmp.lt.s32.totalorder %s160_s21, %s160_s21 }
   0xb   :  { %p167_p6 = por %p166_p5, %p165_p4 }
   0xd   :  { %p168_p7 = pnand %p167_p6, %p161_p3 }
   0xf   :  { %171 = shalt.err (!%p168_p7)
}
  0x10   :  { %20 = dma.hbm_to_vmem [thread:$0]  %s252_s0, 128, %s18_s13, [#allocation4]  }
  0x11   :  { %194 = dma.done.wait [#allocation4], 128  }
  0x12   :  { %195 = vsyncadd [#allocation4], 4294967168  ;;  %v199_v0 = vmov 0.0   ;;  %vm200_vm0 = vmmov 0   ;;  %vm32_vm1 = vcmask 261120   ;;  %v28_v1 = vld [vmem:[#allocation3] sm:$0xff]  ;;  %v31_v3 = vstv %s254_s2 }
  0x13   :  { %137 = vmatprep.subr.mxu0 %v199_v0  ;;  %139 = vmatprep.mubr.msk.f32.mxu0 %vm200_vm0, %v199_v0  ;;  %v29_v2 = vld [vmem:[%s253_s1] sm:$0x1]  ;;  %s201_s0 = smov [#allocation6]   ;;  %vm115_vm2 = vcmask 57344  }
  0x14   :  { %138 = vmatpush3.xpose.msk.msra.mxu0 %vm32_vm1, %v28_v1  ;;  %s123_s28 = sshll.u32 %s201_s0, 4  ;;  %s124_s28 = int_to_ptr.vmem [resolvable:$true] %s123_s28 }
  0x15   :  { %s172_s1 = scalar_lea.vmem %s124_s28, 16  ;;  %s176_s29 = scalar_lea.vmem %s124_s28, 32 }
  0x16   :  { %p173_p8 = scmp.ne.s32.totalorder %s124_s28, %s172_s1  ;;  %p177_p9 = scmp.lt.s32.totalorder %s124_s28, %s124_s28 }
  0x17   :  { %140 = vmatmul.mubr.msk.f32.vlgmr.msra.gmra.mrb[0].mxu0 %vm32_vm1, %v29_v2  ;;  %p178_p10 = scmp.lt.s32.totalorder %s176_s29, %s172_s1 }
  0x19   :  { %p179_p11 = por %p178_p10, %p177_p9 }
  0x1b   :  { %p180_p12 = pnand %p179_p11, %p173_p8 }
  0xea   :  { %v105_v4 = vpop.f32.mrb[0].mxu0 }
  0xeb   :  { %v106_v5 = vadd.f32 %v105_v4, %v31_v3  ;;  %v141_v6 = vpop.f32.mrb[1].mxu0 }
  0xed   :  { %v134_v7 = vmul.f32 -1.442695, %v106_v5 }
  0xef   :  { %146 = vpow2.f32 %v134_v7 }
  0xf9   :  { %v147_v8 = vpop.eup %146 }
  0xfa   :  { %v112_v9 = vadd.f32 1.0, %v147_v8 }
  0xfc   :  { %148 = vrcp.f32 %v112_v9 }
 0x106   :  { %v149_v10 = vpop.eup %148 }
 0x107   :  { %116 = vst.msk [vmem:[#allocation6] sm:$0x1] %vm115_vm2, %v149_v10 }
 0x108   :  { %183 = shalt.err (!%p180_p12)
}
 0x109   :  { %s184_s4 = scalar_lea.hbm %s255_s3, 16 }
 0x10a   :  { %p185_p13 = scmp.ne.s32.totalorder %s255_s3, %s184_s4  ;;  %p188_p0 = scmp.lt.u32.totalorder %s184_s4, %s255_s3 }
 0x10c   :  { %p190_p1 = pnand %p188_p0, %p185_p13 }
 0x10e   :  { %193 = shalt.err (!%p190_p1)
}
 0x10f   :  { %126 = dma.vmem_to_hbm [thread:$0]  %s124_s28, 16, %s255_s3, [#allocation5]  }
 0x110   :  { %196 = dma.done.wait [#allocation5], 16  }
 0x111   :  { %197 = vsyncadd [#allocation5], 4294967280 }
 0x112   :  { %130 = vsyncpa [#allocation4], 1 }
 0x113   :  { %131 = vsyncpa [#allocation5], 1 }

</bundles_post_ra>
